<compile_context>
chip_gen: v5e
topology: v5e:2x2
jax: 0.10.0
libtpu: 0.0.40
codegen_flags: <defaults>
</compile_context>

<pallas_src>
import jax
import jax.numpy as jnp
from jax.experimental import pallas as pl
from jax.experimental.pallas import tpu as pltpu


def _nconv_kernel(a_ref, x_ref, o_ref):
    # a_ref: (V, W)      -- resident in VMEM (constant block index)
    # x_ref: (B, W, L)   -- one contiguous slab of (n,c) rows
    # o_ref: (B, V, L)
    a = a_ref[...]
    nb = x_ref.shape[0]
    for b in range(nb):  # static unroll; B is kept modest by the wrapper
        o_ref[b] = jnp.dot(
            a, x_ref[b], preferred_element_type=jnp.float32
        ).astype(o_ref.dtype)


def _pick_block_rows(nc, w, l, v, itemsize, cap):
    """Number of (n,c) rows per grid step."""
    # Keep double-buffered x/out tiles well under v7x's 64 MiB physical VMEM.
    tile_budget = 24 * 1024 * 1024
    per_row = 2 * (w + v) * l * itemsize            # x + out, double-buffered
    vmem_cap = max(1, tile_budget // max(1, per_row))
    cap = max(1, min(cap, vmem_cap, nc))
    best, best_key = 1, (False, False, 1)
    for b in range(1, cap + 1):
        if nc % b:
            continue
        steps = nc // b
        # priority: >=2 grid steps (megacore) > even step count > larger B
        key = (steps >= 2, steps % 2 == 0, b)
        if key > best_key:
            best, best_key = b, key
    return best


def nconv(x, A, *, compute_dtype=None, max_block_rows=32):
    """Pallas equivalent of torch.einsum('ncwl,vw->ncvl', (x, A)).contiguous().

    x: (N, C, W, L), A: (V, W) -> out: (N, C, V, L)
    """
    N, C, W, L = x.shape
    V, W2 = A.shape
    assert W == W2, f"A second dim {W2} must match x node dim {W}"

    out_dtype = x.dtype
    if compute_dtype is not None:
        x = x.astype(compute_dtype)
        A = A.astype(compute_dtype)
    itemsize = jnp.dtype(x.dtype).itemsize

    NC = N * C
    x3 = x.reshape(NC, W, L)          # free contiguous reshape -- no HBM shuffle

    B = _pick_block_rows(NC, W, L, V, itemsize, max_block_rows)
    steps = NC // B

    # Double-buffered x/out tiles + (double-buffered worst case) A, with
    # headroom; capped below v7x's 64 MiB VMEM, above v5e's 16 MiB default.
    tile_bytes = 2 * B * (W + V) * L * itemsize + 2 * V * W * itemsize
    vmem_limit = int(min(max(2 * tile_bytes, 8 * 1024 * 1024), 48 * 1024 * 1024))

    cost = pl.CostEstimate(
        flops=2 * NC * V * W * L,
        transcendentals=0,
        bytes_accessed=(NC * W * L + V * W + NC * V * L) * itemsize,
    )

    out3 = pl.pallas_call(
        _nconv_kernel,
        out_shape=jax.ShapeDtypeStruct((NC, V, L), out_dtype),
        grid_spec=pltpu.PrefetchScalarGridSpec(
            num_scalar_prefetch=0,
            grid=(steps,),
            in_specs=[
                # A: same block every step -> DMA'd once, stays resident.
                pl.BlockSpec((V, W), lambda m: (0, 0)),
                # x: natural-layout contiguous (B, W, L) slab per step.
                pl.BlockSpec((B, W, L), lambda m: (m, 0, 0)),
            ],
            # out: natural-layout contiguous (B, V, L) slab per step.
            out_specs=pl.BlockSpec((B, V, L), lambda m: (m, 0, 0)),
        ),
        compiler_params=pltpu.CompilerParams(
            dimension_semantics=("parallel",),
            vmem_limit_bytes=vmem_limit,
        ),
        cost_estimate=cost,
    )(A, x3)

    return out3.reshape(N, C, V, L)   # free reshape back to (N, C, V, L)


if __name__ == "__main__":
    key = jax.random.PRNGKey(0)
    kx, ka = jax.random.split(key)

    # N=2 batch, C=4 channels, W=16 nodes, L=16 sequence length; A is (V=16, W=16)
    N, C, W, L = 2, 4, 16, 16
    V = 16
    x = jax.random.normal(kx, (N, C, W, L), dtype=jnp.float32)
    A = jax.random.normal(ka, (V, W), dtype=jnp.float32)

    out = jax.block_until_ready(nconv(x, A))

    # reference check against plain-JAX einsum (same semantics as the torch einsum)
    ref = jnp.einsum("ncwl,vw->ncvl", x, A)
    assert out.shape == (N, C, V, L)
    assert jnp.allclose(out, ref, atol=1e-5, rtol=1e-5), "mismatch vs reference"

    print("KERNEL_OK")
</pallas_src>

<mosaic_0001>
module attributes {stable_mosaic.version = 11 : i64} {
  func.func @_nconv_kernel(%arg0: i32, %arg1: memref<16x16xf32, #tpu.memory_space<vmem>>, %arg2: memref<4x16x16xf32, #tpu.memory_space<vmem>>, %arg3: memref<4x16x16xf32, #tpu.memory_space<vmem>>) attributes {dimension_semantics = [#tpu.dimension_semantics<parallel>], iteration_bounds = array<i64: 2>, scalar_prefetch = 0 : i64, scratch_operands = 0 : i64, tpu.core_type = #tpu.core_type<tc>, window_params = [{pipeline_mode = #tpu.pipeline_mode<synchronous>, transform_indices = @transform_0, window_bounds = array<i64: 16, 16>}, {transform_indices = @transform_1, window_bounds = array<i64: 4, 16, 16>}, {transform_indices = @transform_2, window_bounds = array<i64: 4, 16, 16>}]} {
    %c0 = arith.constant 0 : index
    %c0_0 = arith.constant 0 : index
    %0 = vector.load %arg1[%c0, %c0_0] : memref<16x16xf32, #tpu.memory_space<vmem>>, vector<16x16xf32>
    %c0_1 = arith.constant 0 : index
    %c0_2 = arith.constant 0 : index
    %c0_3 = arith.constant 0 : index
    %1 = vector.load %arg2[%c0_1, %c0_2, %c0_3] : memref<4x16x16xf32, #tpu.memory_space<vmem>>, vector<1x16x16xf32>
    %2 = vector.shape_cast %1 : vector<1x16x16xf32> to vector<16x16xf32>
    %cst = arith.constant dense<0.000000e+00> : vector<16x16xf32>
    %3 = tpu.matmul %0, %2, %cst {dimension_numbers = #tpu.dot_dimension_numbers<[1], [0], [0], [1], [0, 0, 1, 1], [], []>} : vector<16x16xf32>, vector<16x16xf32>, vector<16x16xf32> -> vector<16x16xf32>
    %c0_4 = arith.constant 0 : index
    %c0_5 = arith.constant 0 : index
    %c0_6 = arith.constant 0 : index
    %4 = vector.load %arg3[%c0_4, %c0_5, %c0_6] : memref<4x16x16xf32, #tpu.memory_space<vmem>>, vector<1x16x16xf32>
    %5 = vector.shape_cast %4 : vector<1x16x16xf32> to vector<16x16xf32>
    %6 = vector.shape_cast %3 : vector<16x16xf32> to vector<1x16x16xf32>
    tpu.vector_store %arg3[%c0_4, %c0_5, %c0_6], %6 {strides = array<i32>} : memref<4x16x16xf32, #tpu.memory_space<vmem>>, vector<1x16x16xf32>,
    %c1 = arith.constant 1 : index
    %c0_7 = arith.constant 0 : index
    %c0_8 = arith.constant 0 : index
    %7 = vector.load %arg2[%c1, %c0_7, %c0_8] : memref<4x16x16xf32, #tpu.memory_space<vmem>>, vector<1x16x16xf32>
    %8 = vector.shape_cast %7 : vector<1x16x16xf32> to vector<16x16xf32>
    %cst_9 = arith.constant dense<0.000000e+00> : vector<16x16xf32>
    %9 = tpu.matmul %0, %8, %cst_9 {dimension_numbers = #tpu.dot_dimension_numbers<[1], [0], [0], [1], [0, 0, 1, 1], [], []>} : vector<16x16xf32>, vector<16x16xf32>, vector<16x16xf32> -> vector<16x16xf32>
    %c1_10 = arith.constant 1 : index
    %c0_11 = arith.constant 0 : index
    %c0_12 = arith.constant 0 : index
    %10 = vector.load %arg3[%c1_10, %c0_11, %c0_12] : memref<4x16x16xf32, #tpu.memory_space<vmem>>, vector<1x16x16xf32>
    %11 = vector.shape_cast %10 : vector<1x16x16xf32> to vector<16x16xf32>
    %12 = vector.shape_cast %9 : vector<16x16xf32> to vector<1x16x16xf32>
    tpu.vector_store %arg3[%c1_10, %c0_11, %c0_12], %12 {strides = array<i32>} : memref<4x16x16xf32, #tpu.memory_space<vmem>>, vector<1x16x16xf32>,
    %c2 = arith.constant 2 : index
    %c0_13 = arith.constant 0 : index
    %c0_14 = arith.constant 0 : index
    %13 = vector.load %arg2[%c2, %c0_13, %c0_14] : memref<4x16x16xf32, #tpu.memory_space<vmem>>, vector<1x16x16xf32>
    %14 = vector.shape_cast %13 : vector<1x16x16xf32> to vector<16x16xf32>
    %cst_15 = arith.constant dense<0.000000e+00> : vector<16x16xf32>
    %15 = tpu.matmul %0, %14, %cst_15 {dimension_numbers = #tpu.dot_dimension_numbers<[1], [0], [0], [1], [0, 0, 1, 1], [], []>} : vector<16x16xf32>, vector<16x16xf32>, vector<16x16xf32> -> vector<16x16xf32>
    %c2_16 = arith.constant 2 : index
    %c0_17 = arith.constant 0 : index
    %c0_18 = arith.constant 0 : index
    %16 = vector.load %arg3[%c2_16, %c0_17, %c0_18] : memref<4x16x16xf32, #tpu.memory_space<vmem>>, vector<1x16x16xf32>
    %17 = vector.shape_cast %16 : vector<1x16x16xf32> to vector<16x16xf32>
    %18 = vector.shape_cast %15 : vector<16x16xf32> to vector<1x16x16xf32>
    tpu.vector_store %arg3[%c2_16, %c0_17, %c0_18], %18 {strides = array<i32>} : memref<4x16x16xf32, #tpu.memory_space<vmem>>, vector<1x16x16xf32>,
    %c3 = arith.constant 3 : index
    %c0_19 = arith.constant 0 : index
    %c0_20 = arith.constant 0 : index
    %19 = vector.load %arg2[%c3, %c0_19, %c0_20] : memref<4x16x16xf32, #tpu.memory_space<vmem>>, vector<1x16x16xf32>
    %20 = vector.shape_cast %19 : vector<1x16x16xf32> to vector<16x16xf32>
    %cst_21 = arith.constant dense<0.000000e+00> : vector<16x16xf32>
    %21 = tpu.matmul %0, %20, %cst_21 {dimension_numbers = #tpu.dot_dimension_numbers<[1], [0], [0], [1], [0, 0, 1, 1], [], []>} : vector<16x16xf32>, vector<16x16xf32>, vector<16x16xf32> -> vector<16x16xf32>
    %c3_22 = arith.constant 3 : index
    %c0_23 = arith.constant 0 : index
    %c0_24 = arith.constant 0 : index
    %22 = vector.load %arg3[%c3_22, %c0_23, %c0_24] : memref<4x16x16xf32, #tpu.memory_space<vmem>>, vector<1x16x16xf32>
    %23 = vector.shape_cast %22 : vector<1x16x16xf32> to vector<16x16xf32>
    %24 = vector.shape_cast %21 : vector<16x16xf32> to vector<1x16x16xf32>
    tpu.vector_store %arg3[%c3_22, %c0_23, %c0_24], %24 {strides = array<i32>} : memref<4x16x16xf32, #tpu.memory_space<vmem>>, vector<1x16x16xf32>,
    return
  }
  func.func @transform_0(%arg0: i32) -> (i32, i32) {
    %c0_i32 = arith.constant 0 : i32
    %c0_i32_0 = arith.constant 0 : i32
    %c0_i32_1 = arith.constant 0 : i32
    return %c0_i32, %c0_i32_0 : i32, i32
  }
  func.func @transform_1(%arg0: i32) -> (i32, i32, i32) {
    %c0_i32 = arith.constant 0 : i32
    %c0_i32_0 = arith.constant 0 : i32
    %c0_i32_1 = arith.constant 0 : i32
    return %arg0, %c0_i32, %c0_i32_0 : i32, i32, i32
  }
  func.func @transform_2(%arg0: i32) -> (i32, i32, i32) {
    %c0_i32 = arith.constant 0 : i32
    %c0_i32_0 = arith.constant 0 : i32
    %c0_i32_1 = arith.constant 0 : i32
    return %arg0, %c0_i32, %c0_i32_0 : i32, i32, i32
  }
}

</mosaic_0001>

<bundles_post_ra>
// kernel: tpu_custom_call.1
= control target key start
LH: loop header
LB: loop body
LE: loop exit
PB: predicated region body
PF: predicated region fallthrough
CT: control target
= control target key end

     0   :  { %7 = vsyncpa [#allocation3], 0  ;;  %s828_s0 = inlined_call_operand.hbm [shape: f32[16,16], index: 0, kind: input, shape index: {}]   ;;  %s829_s1 = inlined_call_operand.hbm [shape: f32[8,16,16], index: 1, kind: input, shape index: {}]   ;;  %s830_s2 = inlined_call_operand.hbm [shape: f32[8,16,16], index: 2, kind: output, shape index: {}]  }
   0x1   :  { %8 = vsyncpa [#allocation6], 0 }
   0x2   :  { %10 = vsyncpa [#allocation6 + $0x1], 0 }
   0x3   :  { %11 = vsyncpa [#allocation4], 0 }
   0x4   :  { %13 = vsyncpa [#allocation4 + $0x1], 0  ;;  %s664_s9 = smov 0   ;;  %s666_s10 = smov 0  }
   0x5   :  { %s668_s11 = smov 0   ;;  %s670_s12 = smov 0  }
   0x6 LB: > { %s685_s13 = sadd.s32 4294967295, %s642_s12   ;;  %s409_s14 = sadd.s32 4294967294, %s642_s12   ;;  %s642_s12 = sphi %s670_s12, %s840_s12   ;;  %s638_s11 = sphi %s668_s11, %s839_s11   ;;  %s634_s10 = sphi %s666_s10, %s838_s10   ;;  %s630_s9 = sphi %s664_s9, %s837_s9  }
   0x7   : > { %p60_p0 = scmp.ne.s32.totalorder %s634_s10, %s630_s9  ;;  %p61_p1 = scmp.eq.s32.totalorder %s685_s13, 0 }
   0x8   : > { %p84_p2 = scmp.eq.s32.totalorder %s685_s13, 1  ;;  %p90_p3 = scmp.eq.s32.totalorder %s409_s14, 1 }
   0x9   : > { %p694_p4 = por %p61_p1, %p60_p0  ;;  %p410_p5 = scmp.ge.s32.totalorder %s642_s12, 1 }
   0xa   : > { %p699_p6 = por %p90_p3, %p60_p0  ;;  %p97_p7 = scmp.lt.s32.totalorder %s642_s12, 3 }
   0xb   : > { %s108_s19 = sshll.u32 %s828_s0, 4  ;;  %s644_s21 = smov [#allocation2]   ;;  %s109_s19 = int_to_ptr.hbm [resolvable:$true] %s108_s19 }
   0xc   : > { %p707_p8 = pnand %p410_p5, %p97_p7  ;;  %s110_s22 = sshll.u32 %s644_s21, 4  ;;  %s111_s22 = int_to_ptr.vmem [resolvable:$true] %s110_s22 }
   0xd   : > { %s717_s23 = sadd.s32 1, %s642_s12   ;;  %s645_s24 = smov 128  }
   0xe   : > { %p459_p9 = pneg %p707_p8  ;;  %s646_s25 = smov 8  }
   0xf   : > { %s44_s26 = ssub.s32 %s642_s12, %s717_s23  ;;  %s47_s27 = sadd.s32 1, %s638_s11 }
  0x10   : > { %p460_p10 = pnand %p459_p9, %p61_p1  ;;  %p45_p12 = scmp.eq.s32.totalorder %s44_s26, 0 }
  0x11   : > { %p54_p13 = scmp.ne.s32.totalorder %s638_s11, %s634_s10  ;;  %p55_p0 = scmp.eq.s32.totalorder %s642_s12, 0 }
  0x12   : > { %462 = dma.hbm_to_vmem [thread:$0]  (!%p460_p10), %s109_s19, 256, %s111_s22, [#allocation3], %s645_s24, %s645_s24, %s646_s25  }
  0x13   : > { %s729_s28 = scalar_select %p45_p12, %s638_s11, %s47_s27  }
  0x14   : > { %p733_p3 = por %p84_p2, %p54_p13  ;;  %p472_p5 = scmp.lt.s32.totalorder %s642_s12, 2 }
  0x15   : > { %s124_s30 = sand.u32 1, %s638_s11   ;;  %s448_s3 = sshll.u32 %s642_s12, 6 }
  0x16   : > { %p56_p7 = por %p55_p0, %p54_p13  ;;  %s413_s4 = sshll.u32 %s124_s30, 6 }
  0x17   : > { %s134_s7 = scalar_lea.hbm %s829_s1, %s448_s3  ;;  %s128_s14 = scalar_lea.vmem [#allocation5], %s413_s4 }
  0x18   : > { %s135_s8 = sshll.u32 %s134_s7, 4  ;;  %s137_s17 = sshll.u32 %s128_s14, 4  ;;  %s136_s8 = int_to_ptr.hbm [resolvable:$true] %s135_s8  ;;  %s138_s17 = int_to_ptr.vmem [resolvable:$true] %s137_s17 }
  0x19   : > { %p743_p9 = pnand %p472_p5, %p56_p7  ;;  %s125_s19 = scalar_lea.sflag [#allocation6], %s124_s30 }
  0x1a   : > { %s542_s21 = sshra.s32 %s136_s8, 4  ;;  %s549_s3 = scalar_lea.hbm %s829_s1, 128  ;;  %s543_s21 = int_to_ptr.hbm [resolvable:$true] %s542_s21 }
  0x1b   : > { %s544_s22 = scalar_lea.hbm %s543_s21, 64  ;;  %p546_p10 = pneg %p743_p9 }
  0x1c   : > { %p545_p2 = scmp.ne.s32.totalorder %s543_s21, %s544_s22  ;;  %p550_p0 = scmp.lt.s32.totalorder %s543_s21, %s829_s1 }
  0x1d   : > { %p551_p5 = scmp.lt.s32.totalorder %s549_s3, %s544_s22 }
  0x1e   : > { %p547_p12 = pnand %p546_p10, %p545_p2 }
  0x1f   : > { %p552_p7 = por %p551_p5, %p550_p0 }
  0x20   : > { %p548_p13 = pneg %p547_p12 }
  0x22   : > { %p553_p11 = pnand %p552_p7, %p548_p13 }
  0x24   : > { %556 = shalt.err (!%p553_p11)
}
  0x25   : > { %466 = dma.hbm_to_vmem [thread:$0]  (!%p743_p9), %s136_s8, 1024, %s138_s17, %s125_s19, %s645_s24, %s645_s24, %s646_s25  }
  0x26   : > { %149 = sbr.rel (%p707_p8) target bundleno = 197 (0xc5), region = 28 }
  0x2b   : > { %617 = dma.done.wait (%p61_p1), [#allocation3], 256  }
  0x2c   : > { %619 = vsyncadd (%p61_p1), [#allocation3], 4294967040  ;;  %s767_s30 = sand.u32 1, %s634_s10  }
  0x2d   : > { %s419_s6 = sshll.u32 %s767_s30, 6  ;;  %s157_s7 = scalar_lea.sflag [#allocation6], %s767_s30 }
  0x2e   : > { %s160_s24 = scalar_lea.vmem [#allocation5], %s419_s6 }
  0x2f   : > { %621 = dma.done.wait (%p694_p4), %s157_s7, 1024  }
  0x30   : > { %623 = vsyncadd (%p694_p4), %s157_s7, 4294966272  ;;  %v430_v0 = vld [vmem:[%s160_s24 + $0x28] sm:$0xff]  ;;  %v436_v1 = vld [vmem:[%s160_s24 + $0x38] sm:$0xff]  ;;  %vm188_vm0 = vcmask 130048   ;;  %s181_s15 = scalar_lea.vmem [#allocation7], %s419_s6  ;;  %s450_s20 = sshll.u32 %s685_s13, 6 }
  0x31   : > { %v429_v2 = vld [vmem:[%s160_s24 + $0x20] sm:$0xff]  ;;  %266 = vmatpush.msra.mxu2 %v430_v0  ;;  %295 = vmatpush.msra.mxu3 %v436_v1  ;;  %v435_v3 = vld [vmem:[%s160_s24 + $0x30] sm:$0xff]  ;;  %v187_v5 = vld [vmem:[%s160_s24 + $0x8] sm:$0xff]  ;;  %s320_s14 = scalar_lea.hbm %s830_s2, %s450_s20  ;;  %s321_s17 = sshll.u32 %s181_s15, 4  ;;  %s322_s17 = int_to_ptr.vmem [resolvable:$true] %s321_s17 }
  0x32   : > { %v184_v4 = vld [vmem:[#allocation2] sm:$0xff]  ;;  %209 = vmatpush.msra.mxu0 %v187_v5  ;;  %v424_v6 = vld [vmem:[%s160_s24 + $0x18] sm:$0xff]  ;;  %v186_v7 = vld [vmem:[%s160_s24] sm:$0xff]  ;;  %s323_s18 = sshll.u32 %s320_s14, 4  ;;  %s308_s13 = scalar_lea.sflag [#allocation4], %s767_s30  ;;  %s324_s18 = int_to_ptr.hbm [resolvable:$true] %s323_s18 }
  0x33   : > { %267 = vmatpush.msra.mxu2 %v429_v2  ;;  %296 = vmatpush.msra.mxu3 %v435_v3  ;;  %v423_v8 = vld [vmem:[%s160_s24 + $0x10] sm:$0xff]  ;;  %v185_v9 = vld [vmem:[#allocation2 + $0x8] sm:$0xff]  ;;  %s586_s19 = sshra.s32 %s324_s18, 4  ;;  %s592_s27 = scalar_lea.hbm %s830_s2, 128  ;;  %s587_s19 = int_to_ptr.hbm [resolvable:$true] %s586_s19 }
  0x34   : > { %431 = vmatmul.msk.f32.vlgmr.msra.gmra.mxu2 %vm188_vm0, %v184_v4  ;;  %437 = vmatmul.msk.f32.vlgmr.msra.gmra.mxu3 %vm188_vm0, %v184_v4  ;;  %s588_s21 = scalar_lea.hbm %s587_s19, 64  ;;  %p593_p11 = scmp.lt.s32.totalorder %s587_s19, %s830_s2 }
  0x35   : > { %237 = vmatpush.msra.mxu1 %v424_v6  ;;  %210 = vmatpush.msra.mxu0 %v186_v7  ;;  %p589_p1 = scmp.ne.s32.totalorder %s587_s19, %s588_s21  ;;  %p594_p9 = scmp.lt.s32.totalorder %s592_s27, %s588_s21 }
  0x36   : > { %421 = vmatmul.msk.f32.vlgmr.msra.gmra.mxu0 %vm188_vm0, %v184_v4 }
  0x37   : > { %238 = vmatpush.msra.mxu1 %v423_v8  ;;  %p590_p4 = pnand %p589_p1, %p733_p3  ;;  %p595_p2 = por %p594_p9, %p593_p11 }
  0x38   : > { %425 = vmatmul.msk.f32.vlgmr.msra.gmra.mxu1 %vm188_vm0, %v184_v4 }
  0x39   : > { %p591_p8 = pneg %p590_p4 }
  0x3b   : > { %p596_p10 = pnand %p595_p2, %p591_p8 }
  0x3c   : > { %432 = vmatmul.msk.f32.gmra.mxu2 %vm188_vm0, %v185_v9  ;;  %438 = vmatmul.msk.f32.gmra.mxu3 %vm188_vm0, %v185_v9 }
  0x3e   : > { %422 = vmatmul.msk.f32.gmra.mxu0 %vm188_vm0, %v185_v9 }
  0x40   : > { %426 = vmatmul.msk.f32.gmra.mxu1 %vm188_vm0, %v185_v9 }
  0xb3   : > { %v212_v10 = vpop.f32.mrf.mxu0 }
  0xb4   : > { %218 = vst.msk [vmem:[%s181_s15] sm:$0xff] %vm188_vm0, %v212_v10 }
  0xb5   : > { %v240_v11 = vpop.f32.mrf.mxu1 }
  0xb6   : > { %427 = vst.msk [vmem:[%s181_s15 + $0x10] sm:$0xff] %vm188_vm0, %v240_v11 }
  0xb7   : > { %v269_v12 = vpop.f32.mrf.mxu2  ;;  %v298_v13 = vpop.f32.mrf.mxu3 }
  0xb8   : > { %433 = vst.msk [vmem:[%s181_s15 + $0x20] sm:$0xff] %vm188_vm0, %v269_v12 }
  0xb9   : > { %439 = vst.msk [vmem:[%s181_s15 + $0x30] sm:$0xff] %vm188_vm0, %v298_v13 }
  0xbb   : > { %v215_v14 = vpop.f32.mrf.mxu0 }
  0xbc   : > { %219 = vst.msk [vmem:[%s181_s15 + $0x8] sm:$0xff] %vm188_vm0, %v215_v14 }
  0xbd   : > { %v243_v15 = vpop.f32.mrf.mxu1 }
  0xbe   : > { %428 = vst.msk [vmem:[%s181_s15 + $0x18] sm:$0xff] %vm188_vm0, %v243_v15 }
  0xbf   : > { %v272_v16 = vpop.f32.mrf.mxu2  ;;  %v301_v17 = vpop.f32.mrf.mxu3 }
  0xc0   : > { %434 = vst.msk [vmem:[%s181_s15 + $0x28] sm:$0xff] %vm188_vm0, %v272_v16 }
  0xc1   : > { %440 = vst.msk [vmem:[%s181_s15 + $0x38] sm:$0xff] %vm188_vm0, %v301_v17 }
  0xc2   : > { %599 = shalt.err (!%p596_p10)
}
  0xc3   : > { %s647_s5 = smov 128   ;;  %s648_s30 = smov 8  }
  0xc4   : > { %457 = dma.vmem_to_hbm [thread:$0]  (%p733_p3), %s322_s17, 1024, %s324_s18, %s308_s13, %s647_s5, %s647_s5, %s648_s30  }
  0xc5 PF: > { %s338_s6 = sand.u32 1, %s630_s9   ;;  %p836_p12 = scmp.ge.s32.totalorder %s642_s12, 2 }
  0xc6   : > { %s339_s7 = scalar_lea.sflag [#allocation4], %s338_s6 }
  0xc7   : > { %p468_p13 = pnand %p836_p12, %p699_p6 }
  0xc9   : > { %p469_p0 = pneg %p468_p13 }
  0xcb   : > { %625 = dma.done.wait (%p469_p0), %s339_s7, 1024  }
  0xcc   : > { %627 = vsyncadd (%p469_p0), %s339_s7, 4294966272  ;;  %p16_p5 = scmp.ge.s32.totalorder %s717_s23, 4   ;;  %s837_s9 = smov %s634_s10 }
  0xcd   : > { %s838_s10 = smov %s638_s11  ;;  %s839_s11 = smov %s729_s28 }
  0xce   : > { %s840_s12 = smov %s717_s23  ;;  %18 = sbr.rel (!%p16_p5) target bundleno = 6 (0x6), region = 84 }
  0xd3   :  { %345 = vsyncpa [#allocation3], 1 }
  0xd4   :  { %347 = vsyncpa [#allocation3 + $0x1], 1 }
  0xd5   :  { %348 = vsyncpa [#allocation6], 1 }
  0xd6   :  { %350 = vsyncpa [#allocation6 + $0x1], 1 }
  0xd7   :  { %351 = vsyncpa [#allocation4], 1 }
  0xd8   :  { %353 = vsyncpa [#allocation4 + $0x1], 1 }

</bundles_post_ra>
